<compile_context>
chip_gen: v6e
topology: v6e:2x2x1
jax: 0.10.0
libtpu: 0.0.40
codegen_flags: <defaults>
</compile_context>

<pallas_src>
import functools

import jax
import jax.numpy as jnp
from jax import lax
from jax.experimental import pallas as pl
from jax.experimental.pallas import tpu as pltpu


_MIN_STEP_LANES = 128 * 32   # ~1 us of per-step work; below 2x this, do not split the grid


def _round_up(x: int, m: int) -> int:
    return ((x + m - 1) // m) * m


def _cdiv(a: int, b: int) -> int:
    return -(-a // b)


def _choose_tiling(n: int, tile_n: int):
    """Pick (padded_n, blk_n, n_steps): lane padding, block width, grid size."""
    padded = _round_up(max(n, 128), 128)
    if padded < 2 * _MIN_STEP_LANES:
        return padded, padded, 1                       # tiny batch: one grid step
    n_steps = max(2, _cdiv(padded, tile_n))            # >=2 parallel steps (v7x megacore)
    blk = _round_up(_cdiv(padded, n_steps), 128)
    return blk * n_steps, blk, n_steps


def _pack_params(params, s_pad: int):
    """Pack [W0, b0, W1, b1, ...] into one (s_pad, n_chunks*128) f32 slab.

    Each 128-lane chunk holds one weight column (or the bias) of a layer, zero-padded to
    s_pad sublanes and replicated across all 128 lanes, so the kernel's FMA chain uses
    lane-dense (s_pad, 128) tiles directly (no in-kernel lane broadcasts).
    Returns (slab, layer_dims) with layer_dims = [(f_out, f_in), ...] in layer order.
    """
    chunks, layer_dims = [], []
    for i in range(0, len(params), 2):
        w = params[i].astype(jnp.float32)
        b = params[i + 1].astype(jnp.float32).reshape(-1, 1)
        f_out, f_in = w.shape
        wp = jnp.zeros((s_pad, f_in), jnp.float32).at[:f_out].set(w)
        bp = jnp.zeros((s_pad, 1), jnp.float32).at[:f_out].set(b)
        chunks.append(jnp.repeat(wp, 128, axis=1))     # (s_pad, f_in*128)
        chunks.append(jnp.repeat(bp, 128, axis=1))     # (s_pad, 128)
        layer_dims.append((f_out, f_in))
    return jnp.concatenate(chunks, axis=1), layer_dims


def _make_kernel(n_states: int, dt: float, n_layers: int, layer_dims, s_pad: int,
                 blk_n: int):
    """Kernel over (xu_T tile (D, blk_n), param slab, out_T tile (n_states, blk_n))."""
    ncol = blk_n // 128

    # Static chunk offsets (in units of 128 lanes) of each layer inside the slab.
    offs, c = [], 0
    for (_, f_in) in layer_dims:
        offs.append(c)
        c += f_in + 1

    def kernel(xu_ref, slab_ref, out_ref):
        # Loop-invariant, lane-replicated (s_pad, 128) weight / bias tiles (one vld each).
        w_tiles, b_tiles = [], []
        for (_, f_in), off in zip(layer_dims, offs):
            w_tiles.append([slab_ref[:, (off + k) * 128:(off + k + 1) * 128]
                            for k in range(f_in)])
            b_tiles.append(slab_ref[:, (off + f_in) * 128:(off + f_in + 1) * 128])

        def dense(li, h):
            # (s_pad, 128) = W_li @ h + b_li as an unrolled VPU FMA chain (f32 accum).
            # The only cross-sublane op is the sublane broadcast of h's row k.
            acc = b_tiles[li]
            for k, wt in enumerate(w_tiles[li]):
                acc = acc + wt * h[k:k + 1, :]
            return acc
            # TODO(synk): if bundle dumps show the h-row sublane broadcast binds the
            # 2-wide XLU slot (v6e/v7x), stage h in VMEM scratch and reload rows with a
            # stride-0 sublane-broadcast load to move the replicate onto the vld slot.

        def column(base, carry):
            if not isinstance(base, int):
                base = pl.multiple_of(base, 128)
            x = xu_ref[:, pl.ds(base, 128)].astype(jnp.float32)       # (D, 128)
            h = jnp.tanh(dense(0, x))                                 # input layer
            for l in range(n_layers):                                 # hidden layers
                h = jnp.tanh(dense(1 + l, h))
            dx = dense(1 + n_layers, h)                               # output layer
            out_ref[:, pl.ds(base, 128)] = (
                x[:n_states, :] + dx[:n_states, :] * dt).astype(out_ref.dtype)
            return carry

        if ncol <= 8:
            # Small block: fully unrolled at trace time, zero loop overhead.
            for ci in range(ncol):
                column(ci * 128, 0)
        else:
            # Manual 2x unroll of the column loop to amortize fori_loop overhead.
            def two_columns(ci, carry):
                base = ci * 256
                column(base, carry)
                column(base + 128, carry)
                return carry

            lax.fori_loop(0, ncol // 2, two_columns, 0)
            if ncol % 2:
                column((ncol - 1) * 128, 0)

    return kernel


@functools.partial(jax.jit, static_argnames=("n_states", "dt", "n_layers", "tile_n"))
def dynamics_model_forward(xu, params, *, n_states: int, dt: float, n_layers: int,
                           tile_n: int = 65536):
    """DynamicsModel forward pass (Pallas TPU kernel).

    xu:     (N, n_states + n_actions) float32
    params: flat list [W_in, b_in, (W_h, b_h) * n_layers, W_out, b_out];
            W: (out_features, in_features) (PyTorch layout), b: (out_features,).
    Returns (N, n_states) float32.
    """
    N, D = xu.shape
    assert tile_n % 128 == 0, "tile_n must be a multiple of the 128-wide lane axis"
    hidden = params[0].shape[0]
    s_pad = _round_up(max(hidden, n_states), 8)        # sublane padding for weight tiles

    slab, layer_dims = _pack_params(params, s_pad)     # one grid-invariant param slab
    padded_n, blk_n, n_steps = _choose_tiling(N, tile_n)

    # Layout plumbing (fused inside this jit): batch on lanes, padded to the block grid.
    xu_t = xu.T                                        # (D, N)
    if padded_n != N:
        xu_t = jnp.pad(xu_t, ((0, 0), (0, padded_n - N)))

    kernel = _make_kernel(n_states, dt, n_layers, layer_dims, s_pad, blk_n)

    grid_spec = pltpu.PrefetchScalarGridSpec(
        num_scalar_prefetch=0,
        grid=(n_steps,),
        in_specs=[pl.BlockSpec((D, blk_n), lambda i: (0, i)),
                  # Full-array block, constant index map -> fetched once, reused.
                  pl.BlockSpec(slab.shape, lambda i: (0, 0))],
        out_specs=pl.BlockSpec((n_states, blk_n), lambda i: (0, i)),
    )

    out_t = pl.pallas_call(
        kernel,
        out_shape=jax.ShapeDtypeStruct((n_states, padded_n), jnp.float32),
        grid_spec=grid_spec,
        compiler_params=pltpu.CompilerParams(
            dimension_semantics=("parallel",),         # batch steps split across TCs (v7x)
            vmem_limit_bytes=32 * 1024 * 1024,         # explicit: v5e default is 16 MiB
        ),
    )(xu_t, slab)

    return out_t[:, :N].T                              # back to (N, n_states)


def init_params(key, n_states, n_actions, hidden, n_layers):
    """Deterministic init. W: (out_features, in_features) (PyTorch layout); b: (out,)."""
    dims = [(hidden, n_states + n_actions)] + [(hidden, hidden)] * n_layers \
        + [(n_states, hidden)]
    params = []
    for fan_out, fan_in in dims:
        key, wk, bk = jax.random.split(key, 3)
        limit = (6.0 / (fan_in + fan_out)) ** 0.5
        params.append(jax.random.uniform(wk, (fan_out, fan_in), jnp.float32, -limit, limit))
        params.append(jax.random.uniform(bk, (fan_out,), jnp.float32, -0.1, 0.1))
    return params


def reference_forward(xu, params, *, n_states, dt, n_layers):
    """Pure-JAX reference (full-f32 matmuls) for correctness checking."""
    def lin(h, w, b):
        return jnp.dot(h, w.T, precision=lax.Precision.HIGHEST) + b

    h = jnp.tanh(lin(xu, params[0], params[1]))
    for l in range(n_layers):
        h = jnp.tanh(lin(h, params[2 + 2 * l], params[3 + 2 * l]))
    dx = lin(h, params[2 + 2 * n_layers], params[3 + 2 * n_layers])
    return xu[:, :n_states] + dx * dt


def _check(xu, params, *, n_states, dt, n_layers, tile_n=65536):
    out = jax.block_until_ready(
        dynamics_model_forward(xu, params, n_states=n_states, dt=dt,
                               n_layers=n_layers, tile_n=tile_n))
    ref = reference_forward(xu, params, n_states=n_states, dt=dt, n_layers=n_layers)
    assert out.shape == (xu.shape[0], n_states)
    err = float(jnp.max(jnp.abs(out - ref)))
    assert jnp.allclose(out, ref, atol=1e-5, rtol=1e-5), err
    return out


if __name__ == "__main__":
    # Module defaults: n_states=4, n_actions=2 -> states_hidden = 2*n_states = 8,
    # n_layers=1, dt=0.05.
    n_states, n_actions, n_layers, dt = 4, 2, 1, 0.05
    hidden = n_states * 2

    key = jax.random.PRNGKey(0)
    key, pk = jax.random.split(key)
    params = init_params(pk, n_states, n_actions, hidden, n_layers)

    # 1) Default small batch (N=64): single grid step, padded to 128 lanes, 1 column.
    key, k1 = jax.random.split(key)
    xu1 = jax.random.normal(k1, (64, n_states + n_actions), jnp.float32)
    _check(xu1, params, n_states=n_states, dt=dt, n_layers=n_layers)

    # 2) Mid batch (N=384): single step, several 128-lane columns (trace-time unrolled).
    key, k2 = jax.random.split(key)
    xu2 = jax.random.normal(k2, (384, n_states + n_actions), jnp.float32)
    _check(xu2, params, n_states=n_states, dt=dt, n_layers=n_layers)

    # 3) Larger, non-aligned batch (N=8300): two "parallel" grid steps (v7x megacore),
    #    in-kernel column loop + lane padding exercised.
    key, k3 = jax.random.split(key)
    xu3 = jax.random.normal(k3, (8300, n_states + n_actions), jnp.float32)
    _check(xu3, params, n_states=n_states, dt=dt, n_layers=n_layers)

    print("KERNEL_OK")
</pallas_src>

<mosaic_0001>
module attributes {stable_mosaic.version = 11 : i64} {
  func.func @kernel(%arg0: i32, %arg1: memref<6x128xf32, #tpu.memory_space<vmem>>, %arg2: memref<8x3200xf32, #tpu.memory_space<vmem>>, %arg3: memref<4x128xf32, #tpu.memory_space<vmem>>) attributes {dimension_semantics = [#tpu.dimension_semantics<parallel>], iteration_bounds = array<i64: 1>, scalar_prefetch = 0 : i64, scratch_operands = 0 : i64, tpu.core_type = #tpu.core_type<tc>, window_params = [{transform_indices = @transform_0, window_bounds = array<i64: 6, 128>}, {pipeline_mode = #tpu.pipeline_mode<synchronous>, transform_indices = @transform_1, window_bounds = array<i64: 8, 3200>}, {transform_indices = @transform_2, window_bounds = array<i64: 4, 128>}]} {
    %c0 = arith.constant 0 : index
    %c0_0 = arith.constant 0 : index
    %0 = vector.load %arg2[%c0, %c0_0] : memref<8x3200xf32, #tpu.memory_space<vmem>>, vector<8x128xf32>
    %c0_1 = arith.constant 0 : index
    %c128 = arith.constant 128 : index
    %1 = vector.load %arg2[%c0_1, %c128] : memref<8x3200xf32, #tpu.memory_space<vmem>>, vector<8x128xf32>
    %c0_2 = arith.constant 0 : index
    %c256 = arith.constant 256 : index
    %2 = vector.load %arg2[%c0_2, %c256] : memref<8x3200xf32, #tpu.memory_space<vmem>>, vector<8x128xf32>
    %c0_3 = arith.constant 0 : index
    %c384 = arith.constant 384 : index
    %3 = vector.load %arg2[%c0_3, %c384] : memref<8x3200xf32, #tpu.memory_space<vmem>>, vector<8x128xf32>
    %c0_4 = arith.constant 0 : index
    %c512 = arith.constant 512 : index
    %4 = vector.load %arg2[%c0_4, %c512] : memref<8x3200xf32, #tpu.memory_space<vmem>>, vector<8x128xf32>
    %c0_5 = arith.constant 0 : index
    %c640 = arith.constant 640 : index
    %5 = vector.load %arg2[%c0_5, %c640] : memref<8x3200xf32, #tpu.memory_space<vmem>>, vector<8x128xf32>
    %c0_6 = arith.constant 0 : index
    %c768 = arith.constant 768 : index
    %6 = vector.load %arg2[%c0_6, %c768] : memref<8x3200xf32, #tpu.memory_space<vmem>>, vector<8x128xf32>
    %c0_7 = arith.constant 0 : index
    %c896 = arith.constant 896 : index
    %7 = vector.load %arg2[%c0_7, %c896] : memref<8x3200xf32, #tpu.memory_space<vmem>>, vector<8x128xf32>
    %c0_8 = arith.constant 0 : index
    %c1024 = arith.constant 1024 : index
    %8 = vector.load %arg2[%c0_8, %c1024] : memref<8x3200xf32, #tpu.memory_space<vmem>>, vector<8x128xf32>
    %c0_9 = arith.constant 0 : index
    %c1152 = arith.constant 1152 : index
    %9 = vector.load %arg2[%c0_9, %c1152] : memref<8x3200xf32, #tpu.memory_space<vmem>>, vector<8x128xf32>
    %c0_10 = arith.constant 0 : index
    %c1280 = arith.constant 1280 : index
    %10 = vector.load %arg2[%c0_10, %c1280] : memref<8x3200xf32, #tpu.memory_space<vmem>>, vector<8x128xf32>
    %c0_11 = arith.constant 0 : index
    %c1408 = arith.constant 1408 : index
    %11 = vector.load %arg2[%c0_11, %c1408] : memref<8x3200xf32, #tpu.memory_space<vmem>>, vector<8x128xf32>
    %c0_12 = arith.constant 0 : index
    %c1536 = arith.constant 1536 : index
    %12 = vector.load %arg2[%c0_12, %c1536] : memref<8x3200xf32, #tpu.memory_space<vmem>>, vector<8x128xf32>
    %c0_13 = arith.constant 0 : index
    %c1664 = arith.constant 1664 : index
    %13 = vector.load %arg2[%c0_13, %c1664] : memref<8x3200xf32, #tpu.memory_space<vmem>>, vector<8x128xf32>
    %c0_14 = arith.constant 0 : index
    %c1792 = arith.constant 1792 : index
    %14 = vector.load %arg2[%c0_14, %c1792] : memref<8x3200xf32, #tpu.memory_space<vmem>>, vector<8x128xf32>
    %c0_15 = arith.constant 0 : index
    %c1920 = arith.constant 1920 : index
    %15 = vector.load %arg2[%c0_15, %c1920] : memref<8x3200xf32, #tpu.memory_space<vmem>>, vector<8x128xf32>
    %c0_16 = arith.constant 0 : index
    %c2048 = arith.constant 2048 : index
    %16 = vector.load %arg2[%c0_16, %c2048] : memref<8x3200xf32, #tpu.memory_space<vmem>>, vector<8x128xf32>
    %c0_17 = arith.constant 0 : index
    %c2176 = arith.constant 2176 : index
    %17 = vector.load %arg2[%c0_17, %c2176] : memref<8x3200xf32, #tpu.memory_space<vmem>>, vector<8x128xf32>
    %c0_18 = arith.constant 0 : index
    %c2304 = arith.constant 2304 : index
    %18 = vector.load %arg2[%c0_18, %c2304] : memref<8x3200xf32, #tpu.memory_space<vmem>>, vector<8x128xf32>
    %c0_19 = arith.constant 0 : index
    %c2432 = arith.constant 2432 : index
    %19 = vector.load %arg2[%c0_19, %c2432] : memref<8x3200xf32, #tpu.memory_space<vmem>>, vector<8x128xf32>
    %c0_20 = arith.constant 0 : index
    %c2560 = arith.constant 2560 : index
    %20 = vector.load %arg2[%c0_20, %c2560] : memref<8x3200xf32, #tpu.memory_space<vmem>>, vector<8x128xf32>
    %c0_21 = arith.constant 0 : index
    %c2688 = arith.constant 2688 : index
    %21 = vector.load %arg2[%c0_21, %c2688] : memref<8x3200xf32, #tpu.memory_space<vmem>>, vector<8x128xf32>
    %c0_22 = arith.constant 0 : index
    %c2816 = arith.constant 2816 : index
    %22 = vector.load %arg2[%c0_22, %c2816] : memref<8x3200xf32, #tpu.memory_space<vmem>>, vector<8x128xf32>
    %c0_23 = arith.constant 0 : index
    %c2944 = arith.constant 2944 : index
    %23 = vector.load %arg2[%c0_23, %c2944] : memref<8x3200xf32, #tpu.memory_space<vmem>>, vector<8x128xf32>
    %c0_24 = arith.constant 0 : index
    %c3072 = arith.constant 3072 : index
    %24 = vector.load %arg2[%c0_24, %c3072] : memref<8x3200xf32, #tpu.memory_space<vmem>>, vector<8x128xf32>
    %c0_25 = arith.constant 0 : index
    %c0_26 = arith.constant 0 : index
    %25 = vector.load %arg1[%c0_25, %c0_26] : memref<6x128xf32, #tpu.memory_space<vmem>>, vector<6x128xf32>
    %26 = vector.extract_strided_slice %25 {offsets = [0, 0], sizes = [1, 128], strides = [1, 1]} : vector<6x128xf32> to vector<1x128xf32>
    %27 = vector.broadcast %26 : vector<1x128xf32> to vector<8x128xf32>
    %28 = arith.mulf %0, %27 : vector<8x128xf32>
    %29 = arith.addf %6, %28 : vector<8x128xf32>
    %30 = vector.extract_strided_slice %25 {offsets = [1, 0], sizes = [1, 128], strides = [1, 1]} : vector<6x128xf32> to vector<1x128xf32>
    %31 = vector.broadcast %30 : vector<1x128xf32> to vector<8x128xf32>
    %32 = arith.mulf %1, %31 : vector<8x128xf32>
    %33 = arith.addf %29, %32 : vector<8x128xf32>
    %34 = vector.extract_strided_slice %25 {offsets = [2, 0], sizes = [1, 128], strides = [1, 1]} : vector<6x128xf32> to vector<1x128xf32>
    %35 = vector.broadcast %34 : vector<1x128xf32> to vector<8x128xf32>
    %36 = arith.mulf %2, %35 : vector<8x128xf32>
    %37 = arith.addf %33, %36 : vector<8x128xf32>
    %38 = vector.extract_strided_slice %25 {offsets = [3, 0], sizes = [1, 128], strides = [1, 1]} : vector<6x128xf32> to vector<1x128xf32>
    %39 = vector.broadcast %38 : vector<1x128xf32> to vector<8x128xf32>
    %40 = arith.mulf %3, %39 : vector<8x128xf32>
    %41 = arith.addf %37, %40 : vector<8x128xf32>
    %42 = vector.extract_strided_slice %25 {offsets = [4, 0], sizes = [1, 128], strides = [1, 1]} : vector<6x128xf32> to vector<1x128xf32>
    %43 = vector.broadcast %42 : vector<1x128xf32> to vector<8x128xf32>
    %44 = arith.mulf %4, %43 : vector<8x128xf32>
    %45 = arith.addf %41, %44 : vector<8x128xf32>
    %46 = vector.extract_strided_slice %25 {offsets = [5, 0], sizes = [1, 128], strides = [1, 1]} : vector<6x128xf32> to vector<1x128xf32>
    %47 = vector.broadcast %46 : vector<1x128xf32> to vector<8x128xf32>
    %48 = arith.mulf %5, %47 : vector<8x128xf32>
    %49 = arith.addf %45, %48 : vector<8x128xf32>
    %50 = math.tanh %49 : vector<8x128xf32>
    %51 = vector.extract_strided_slice %50 {offsets = [0, 0], sizes = [1, 128], strides = [1, 1]} : vector<8x128xf32> to vector<1x128xf32>
    %52 = vector.broadcast %51 : vector<1x128xf32> to vector<8x128xf32>
    %53 = arith.mulf %7, %52 : vector<8x128xf32>
    %54 = arith.addf %15, %53 : vector<8x128xf32>
    %55 = vector.extract_strided_slice %50 {offsets = [1, 0], sizes = [1, 128], strides = [1, 1]} : vector<8x128xf32> to vector<1x128xf32>
    %56 = vector.broadcast %55 : vector<1x128xf32> to vector<8x128xf32>
    %57 = arith.mulf %8, %56 : vector<8x128xf32>
    %58 = arith.addf %54, %57 : vector<8x128xf32>
    %59 = vector.extract_strided_slice %50 {offsets = [2, 0], sizes = [1, 128], strides = [1, 1]} : vector<8x128xf32> to vector<1x128xf32>
    %60 = vector.broadcast %59 : vector<1x128xf32> to vector<8x128xf32>
    %61 = arith.mulf %9, %60 : vector<8x128xf32>
    %62 = arith.addf %58, %61 : vector<8x128xf32>
    %63 = vector.extract_strided_slice %50 {offsets = [3, 0], sizes = [1, 128], strides = [1, 1]} : vector<8x128xf32> to vector<1x128xf32>
    %64 = vector.broadcast %63 : vector<1x128xf32> to vector<8x128xf32>
    %65 = arith.mulf %10, %64 : vector<8x128xf32>
    %66 = arith.addf %62, %65 : vector<8x128xf32>
    %67 = vector.extract_strided_slice %50 {offsets = [4, 0], sizes = [1, 128], strides = [1, 1]} : vector<8x128xf32> to vector<1x128xf32>
    %68 = vector.broadcast %67 : vector<1x128xf32> to vector<8x128xf32>
    %69 = arith.mulf %11, %68 : vector<8x128xf32>
    %70 = arith.addf %66, %69 : vector<8x128xf32>
    %71 = vector.extract_strided_slice %50 {offsets = [5, 0], sizes = [1, 128], strides = [1, 1]} : vector<8x128xf32> to vector<1x128xf32>
    %72 = vector.broadcast %71 : vector<1x128xf32> to vector<8x128xf32>
    %73 = arith.mulf %12, %72 : vector<8x128xf32>
    %74 = arith.addf %70, %73 : vector<8x128xf32>
    %75 = vector.extract_strided_slice %50 {offsets = [6, 0], sizes = [1, 128], strides = [1, 1]} : vector<8x128xf32> to vector<1x128xf32>
    %76 = vector.broadcast %75 : vector<1x128xf32> to vector<8x128xf32>
    %77 = arith.mulf %13, %76 : vector<8x128xf32>
    %78 = arith.addf %74, %77 : vector<8x128xf32>
    %79 = vector.extract_strided_slice %50 {offsets = [7, 0], sizes = [1, 128], strides = [1, 1]} : vector<8x128xf32> to vector<1x128xf32>
    %80 = vector.broadcast %79 : vector<1x128xf32> to vector<8x128xf32>
    %81 = arith.mulf %14, %80 : vector<8x128xf32>
    %82 = arith.addf %78, %81 : vector<8x128xf32>
    %83 = math.tanh %82 : vector<8x128xf32>
    %84 = vector.extract_strided_slice %83 {offsets = [0, 0], sizes = [1, 128], strides = [1, 1]} : vector<8x128xf32> to vector<1x128xf32>
    %85 = vector.broadcast %84 : vector<1x128xf32> to vector<8x128xf32>
    %86 = arith.mulf %16, %85 : vector<8x128xf32>
    %87 = arith.addf %24, %86 : vector<8x128xf32>
    %88 = vector.extract_strided_slice %83 {offsets = [1, 0], sizes = [1, 128], strides = [1, 1]} : vector<8x128xf32> to vector<1x128xf32>
    %89 = vector.broadcast %88 : vector<1x128xf32> to vector<8x128xf32>
    %90 = arith.mulf %17, %89 : vector<8x128xf32>
    %91 = arith.addf %87, %90 : vector<8x128xf32>
    %92 = vector.extract_strided_slice %83 {offsets = [2, 0], sizes = [1, 128], strides = [1, 1]} : vector<8x128xf32> to vector<1x128xf32>
    %93 = vector.broadcast %92 : vector<1x128xf32> to vector<8x128xf32>
    %94 = arith.mulf %18, %93 : vector<8x128xf32>
    %95 = arith.addf %91, %94 : vector<8x128xf32>
    %96 = vector.extract_strided_slice %83 {offsets = [3, 0], sizes = [1, 128], strides = [1, 1]} : vector<8x128xf32> to vector<1x128xf32>
    %97 = vector.broadcast %96 : vector<1x128xf32> to vector<8x128xf32>
    %98 = arith.mulf %19, %97 : vector<8x128xf32>
    %99 = arith.addf %95, %98 : vector<8x128xf32>
    %100 = vector.extract_strided_slice %83 {offsets = [4, 0], sizes = [1, 128], strides = [1, 1]} : vector<8x128xf32> to vector<1x128xf32>
    %101 = vector.broadcast %100 : vector<1x128xf32> to vector<8x128xf32>
    %102 = arith.mulf %20, %101 : vector<8x128xf32>
    %103 = arith.addf %99, %102 : vector<8x128xf32>
    %104 = vector.extract_strided_slice %83 {offsets = [5, 0], sizes = [1, 128], strides = [1, 1]} : vector<8x128xf32> to vector<1x128xf32>
    %105 = vector.broadcast %104 : vector<1x128xf32> to vector<8x128xf32>
    %106 = arith.mulf %21, %105 : vector<8x128xf32>
    %107 = arith.addf %103, %106 : vector<8x128xf32>
    %108 = vector.extract_strided_slice %83 {offsets = [6, 0], sizes = [1, 128], strides = [1, 1]} : vector<8x128xf32> to vector<1x128xf32>
    %109 = vector.broadcast %108 : vector<1x128xf32> to vector<8x128xf32>
    %110 = arith.mulf %22, %109 : vector<8x128xf32>
    %111 = arith.addf %107, %110 : vector<8x128xf32>
    %112 = vector.extract_strided_slice %83 {offsets = [7, 0], sizes = [1, 128], strides = [1, 1]} : vector<8x128xf32> to vector<1x128xf32>
    %113 = vector.broadcast %112 : vector<1x128xf32> to vector<8x128xf32>
    %114 = arith.mulf %23, %113 : vector<8x128xf32>
    %115 = arith.addf %111, %114 : vector<8x128xf32>
    %116 = vector.extract_strided_slice %25 {offsets = [0, 0], sizes = [4, 128], strides = [1, 1]} : vector<6x128xf32> to vector<4x128xf32>
    %117 = vector.extract_strided_slice %115 {offsets = [0, 0], sizes = [4, 128], strides = [1, 1]} : vector<8x128xf32> to vector<4x128xf32>
    %cst = arith.constant 5.000000e-02 : f32
    %118 = vector.broadcast %cst : f32 to vector<4x128xf32>
    %119 = arith.mulf %117, %118 : vector<4x128xf32>
    %120 = arith.addf %116, %119 : vector<4x128xf32>
    %c0_27 = arith.constant 0 : index
    %c0_28 = arith.constant 0 : index
    %121 = vector.load %arg3[%c0_27, %c0_28] : memref<4x128xf32, #tpu.memory_space<vmem>>, vector<4x128xf32>
    tpu.vector_store %arg3[%c0_27, %c0_28], %120 {strides = array<i32>} : memref<4x128xf32, #tpu.memory_space<vmem>>, vector<4x128xf32>,
    return
  }
  func.func @transform_0(%arg0: i32) -> (i32, i32) {
    %c0_i32 = arith.constant 0 : i32
    %c0_i32_0 = arith.constant 0 : i32
    return %c0_i32, %arg0 : i32, i32
  }
  func.func @transform_1(%arg0: i32) -> (i32, i32) {
    %c0_i32 = arith.constant 0 : i32
    %c0_i32_0 = arith.constant 0 : i32
    %c0_i32_1 = arith.constant 0 : i32
    return %c0_i32, %c0_i32_0 : i32, i32
  }
  func.func @transform_2(%arg0: i32) -> (i32, i32) {
    %c0_i32 = arith.constant 0 : i32
    %c0_i32_0 = arith.constant 0 : i32
    return %c0_i32, %arg0 : i32, i32
  }
}

</mosaic_0001>

<bundles_post_ra>
// kernel: dynamics_model_forward.1
= control target key start
LH: loop header
LB: loop body
LE: loop exit
PB: predicated region body
PF: predicated region fallthrough
CT: control target
= control target key end

     0   :  { %v37_v0 = vlaneseq  ;;  %s327_s0 = inlined_call_operand.vmem [shape: f32[6,128], index: 0, kind: input, shape index: {}]   ;;  %s328_s1 = inlined_call_operand.vmem [shape: f32[8,3200], index: 1, kind: input, shape index: {}]   ;;  %s329_s2 = inlined_call_operand.vmem [shape: f32[4,128], index: 2, kind: output, shape index: {}]  }
   0x1   :  { %v11_v6 = vld [vmem:[%s328_s1] sm:$0xff]  ;;  %v12_v7 = vld [vmem:[%s328_s1 + $0x8] sm:$0xff]  ;;  %v13_v13 = vld [vmem:[%s328_s1 + $0x10] sm:$0xff] }
   0x2   :  { %v197_v1 = vshrl.u32 %v37_v0, 7  ;;  %v220_v8 = vld [vmem:[%s327_s0] sm:$0x3f]  ;;  %v17_v14 = vld [vmem:[%s328_s1 + $0x30] sm:$0xff]  ;;  %v14_v19 = vld [vmem:[%s328_s1 + $0x18] sm:$0xff] }
   0x3   :  { %v15_v23 = vld [vmem:[%s328_s1 + $0x20] sm:$0xff]  ;;  %v16_v27 = vld [vmem:[%s328_s1 + $0x28] sm:$0xff]  ;;  %v18_v35 = vld [vmem:[%s328_s1 + $0x38] sm:$0xff] }
   0x4   :  { %v200_v2 = vsub.s32 0, %v197_v1  ;;  %v203_v3 = vsub.s32 1, %v197_v1  ;;  %v206_v4 = vsub.s32 2, %v197_v1  ;;  %v209_v5 = vsub.s32 3, %v197_v1  ;;  %v19_v36 = vld [vmem:[%s328_s1 + $0x40] sm:$0xff]  ;;  %v20_v40 = vld [vmem:[%s328_s1 + $0x48] sm:$0xff] }
   0x5   :  { %v229_v12 = vsub.s32 4, %v197_v1  ;;  %v240_v18 = vsub.s32 5, %v197_v1  ;;  %v26_v41 = vld [vmem:[%s328_s1 + $0x78] sm:$0xff]  ;;  %v21_v45 = vld [vmem:[%s328_s1 + $0x50] sm:$0xff]  ;;  %v112_v49 = vsub.s32 6, %v197_v1  ;;  %v118_v54 = vsub.s32 7, %v197_v1 }
   0x6   :  { %v40_v9 = vrot.slane %v220_v8, %v200_v2  ;;  %v46_v10 = vrot.slane %v220_v8, %v203_v3  ;;  %v52_v11 = vrot.slane %v220_v8, %v206_v4  ;;  %v58_v17 = vrot.slane %v220_v8, %v209_v5  ;;  %v22_v50 = vld [vmem:[%s328_s1 + $0x58] sm:$0xff]  ;;  %v23_v55 = vld [vmem:[%s328_s1 + $0x60] sm:$0xff]  ;;  %v24_v59 = vld [vmem:[%s328_s1 + $0x68] sm:$0xff] }
   0x7   :  { %v64_v22 = vrot.slane %v220_v8, %v229_v12  ;;  %v70_v26 = vrot.slane %v220_v8, %v240_v18  ;;  %v25_v63 = vld [vmem:[%s328_s1 + $0x70] sm:$0xff] }
   0x8   :  { %v41_v15 = vmul.f32 %v40_v9, %v11_v6  ;;  %v47_v16 = vmul.f32 %v46_v10, %v12_v7  ;;  %v53_v21 = vmul.f32 %v52_v11, %v13_v13  ;;  %v59_v25 = vmul.f32 %v58_v17, %v14_v19  ;;  %v27_v11 = vld [vmem:[%s328_s1 + $0x80] sm:$0xff]  ;;  %v32_v19 = vld [vmem:[%s328_s1 + $0xa8] sm:$0xff] }
   0x9   :  { %v65_v29 = vmul.f32 %v64_v22, %v15_v23  ;;  %v71_v31 = vmul.f32 %v70_v26, %v16_v27  ;;  %v31_v17 = vld [vmem:[%s328_s1 + $0xa0] sm:$0xff] }
   0xa   :  { %v42_v20 = vadd.f32 %v41_v15, %v17_v14  ;;  %v28_v14 = vld [vmem:[%s328_s1 + $0x88] sm:$0xff]  ;;  %v29_v15 = vld [vmem:[%s328_s1 + $0x90] sm:$0xff] }
   0xc   :  { %v48_v24 = vadd.f32 %v47_v16, %v42_v20  ;;  %v30_v16 = vld [vmem:[%s328_s1 + $0x98] sm:$0xff] }
   0xe   :  { %v54_v28 = vadd.f32 %v53_v21, %v48_v24  ;;  %v35_v24 = vld [vmem:[%s328_s1 + $0xc0] sm:$0xff] }
  0x10   :  { %v60_v30 = vadd.f32 %v59_v25, %v54_v28 }
  0x12   :  { %v66_v32 = vadd.f32 %v65_v29, %v60_v30 }
  0x14   :  { %v72_v33 = vadd.f32 %v71_v31, %v66_v32 }
  0x16   :  { %178 = vtanh.f32 %v72_v33 }
  0x23   :  { %v179_v34 = vpop.eup %178 }
  0x24   :  { %v77_v37 = vrot.slane %v179_v34, %v200_v2  ;;  %v83_v38 = vrot.slane %v179_v34, %v203_v3  ;;  %v89_v39 = vrot.slane %v179_v34, %v206_v4  ;;  %v95_v44 = vrot.slane %v179_v34, %v209_v5 }
  0x25   :  { %v101_v48 = vrot.slane %v179_v34, %v229_v12  ;;  %v107_v53 = vrot.slane %v179_v34, %v240_v18  ;;  %v113_v58 = vrot.slane %v179_v34, %v112_v49  ;;  %v119_v62 = vrot.slane %v179_v34, %v118_v54 }
  0x26   :  { %v78_v42 = vmul.f32 %v77_v37, %v18_v35  ;;  %v84_v43 = vmul.f32 %v83_v38, %v19_v36  ;;  %v90_v47 = vmul.f32 %v89_v39, %v20_v40  ;;  %v96_v52 = vmul.f32 %v95_v44, %v21_v45 }
  0x27   :  { %v102_v57 = vmul.f32 %v101_v48, %v22_v50  ;;  %v108_v61 = vmul.f32 %v107_v53, %v23_v55  ;;  %v114_v1 = vmul.f32 %v113_v58, %v24_v59  ;;  %v120_v7 = vmul.f32 %v119_v62, %v25_v63 }
  0x28   :  { %v79_v46 = vadd.f32 %v78_v42, %v26_v41 }
  0x2a   :  { %v85_v51 = vadd.f32 %v84_v43, %v79_v46 }
  0x2c   :  { %v91_v56 = vadd.f32 %v90_v47, %v85_v51 }
  0x2e   :  { %v97_v60 = vadd.f32 %v96_v52, %v91_v56 }
  0x30   :  { %v103_v0 = vadd.f32 %v102_v57, %v97_v60 }
  0x32   :  { %v109_v6 = vadd.f32 %v108_v61, %v103_v0 }
  0x34   :  { %v115_v9 = vadd.f32 %v114_v1, %v109_v6 }
  0x36   :  { %v121_v10 = vadd.f32 %v120_v7, %v115_v9 }
  0x38   :  { %180 = vtanh.f32 %v121_v10 }
  0x45   :  { %v181_v13 = vpop.eup %180 }
  0x46   :  { %v126_v20 = vrot.slane %v181_v13, %v200_v2  ;;  %v132_v21 = vrot.slane %v181_v13, %v203_v3  ;;  %v138_v22 = vrot.slane %v181_v13, %v206_v4  ;;  %v144_v23 = vrot.slane %v181_v13, %v209_v5  ;;  %v33_v5 = vld [vmem:[%s328_s1 + $0xb0] sm:$0xff] }
  0x47   :  { %v150_v25 = vrot.slane %v181_v13, %v229_v12  ;;  %v156_v26 = vrot.slane %v181_v13, %v240_v18  ;;  %v162_v4 = vrot.slane %v181_v13, %v112_v49  ;;  %v168_v35 = vrot.slane %v181_v13, %v118_v54  ;;  %v34_v12 = vld [vmem:[%s328_s1 + $0xb8] sm:$0xff] }
  0x48   :  { %v127_v27 = vmul.f32 %v126_v20, %v27_v11  ;;  %v133_v28 = vmul.f32 %v132_v21, %v28_v14  ;;  %v139_v29 = vmul.f32 %v138_v22, %v29_v15  ;;  %v145_v30 = vmul.f32 %v144_v23, %v30_v16 }
  0x49   :  { %v151_v31 = vmul.f32 %v150_v25, %v31_v17  ;;  %v157_v2 = vmul.f32 %v156_v26, %v32_v19  ;;  %v163_v36 = vmul.f32 %v162_v4, %v33_v5  ;;  %v169_v38 = vmul.f32 %v168_v35, %v34_v12 }
  0x4a   :  { %v128_v32 = vadd.f32 %v127_v27, %v35_v24 }
  0x4c   :  { %v134_v3 = vadd.f32 %v133_v28, %v128_v32 }
  0x4e   :  { %v140_v33 = vadd.f32 %v139_v29, %v134_v3 }
  0x50   :  { %v146_v34 = vadd.f32 %v145_v30, %v140_v33 }
  0x52   :  { %v152_v18 = vadd.f32 %v151_v31, %v146_v34 }
  0x54   :  { %v158_v37 = vadd.f32 %v157_v2, %v152_v18 }
  0x56   :  { %v164_v39 = vadd.f32 %v163_v36, %v158_v37 }
  0x58   :  { %v170_v40 = vadd.f32 %v169_v38, %v164_v39 }
  0x5a   :  { %v171_v41 = vmul.f32 0.05, %v170_v40 }
  0x5c   :  { %v172_v42 = vadd.f32 %v171_v41, %v220_v8 }
  0x5e   :  { %173 = vst [vmem:[%s329_s2] sm:$0xf] %v172_v42 }

</bundles_post_ra>
